<compile_context>
chip_gen: v5e
topology: v5e:2x2
jax: 0.10.0
libtpu: 0.0.40
codegen_flags: <defaults>
</compile_context>

<pallas_src>
import math
import numpy as np
import jax
import jax.numpy as jnp
from jax.experimental import pallas as pl
from jax.experimental.pallas import tpu as pltpu

D_MODEL = 512
LEAKY_SLOPE = 0.01       # F.leaky_relu default negative_slope
MAX_ROW_TILE = 1024      # f32: ~2 MiB enc + ~2 MiB out per buffer at this tile


def encoder_to_others_kernel(enc_ref, spc_ref, we_ref, wsb_ref, o_ref):
    # y = [enc | spread | percent_in] @ W + b, with W stored as (in, out):
    #   enc @ W[:512]            -> MXU
    #   + spread * W[512]        -> VPU rank-1 update   (wsb row 0)
    #   + percent_in * W[513]    -> VPU rank-1 update   (wsb row 1)
    #   + bias                   -> VPU                 (wsb row 2)
    spc = spc_ref[...]                                   # (mt, 2)
    wsb = wsb_ref[...]                                   # (3, 512)
    y = jnp.dot(enc_ref[...], we_ref[...],
                preferred_element_type=jnp.float32)      # (mt, 512)
    y = (y
         + spc[:, 0:1] * wsb[0:1, :]
         + spc[:, 1:2] * wsb[1:2, :]
         + wsb[2:3, :])
    o_ref[...] = jnp.where(y > 0, y, LEAKY_SLOPE * y).astype(o_ref.dtype)


def _choose_row_tile(n_rows):
    # Single grid step for small batches (grid is a sequential loop on 1-TC
    # chips, so extra steps only add ~0.35 us each); cap at 1024 rows so large
    # batches stream through HBM near the measured roofline.  On v7x this also
    # naturally yields >= 2 "parallel" steps once n_rows > 1024.
    return min(n_rows, MAX_ROW_TILE)


def encoder_to_others(encoding, spread, percent_in, params):
    # params: (w_t, b) with w_t = PyTorch weight transposed to (514, 512) and
    # b of shape (1, 512).  A real checkpoint's (out, in) weight must be
    # transposed at load time.
    w_t, b = params
    enc = encoding.reshape(-1, D_MODEL).astype(jnp.float32)            # (N, 512)
    n = enc.shape[0]
    spc = jnp.concatenate([spread.reshape(-1, 1),
                           percent_in.reshape(-1, 1)], axis=1)          # (N, 2)
    spc = spc.astype(jnp.float32)

    we = w_t[:D_MODEL].astype(jnp.float32)                              # (512, 512)
    wsb = jnp.concatenate([w_t[D_MODEL:].astype(jnp.float32),
                           b.astype(jnp.float32)], axis=0)              # (3, 512)

    mt = _choose_row_tile(n)
    grid = (pl.cdiv(n, mt),)

    out = pl.pallas_call(
        encoder_to_others_kernel,
        out_shape=jax.ShapeDtypeStruct((n, D_MODEL), jnp.float32),
        grid=grid,
        in_specs=[
            pl.BlockSpec((mt, D_MODEL), lambda i: (i, 0)),      # encoding rows
            pl.BlockSpec((mt, 2), lambda i: (i, 0)),            # [spread | percent_in]
            pl.BlockSpec((D_MODEL, D_MODEL), lambda i: (0, 0)),  # W[:512,:] (resident)
            pl.BlockSpec((3, D_MODEL), lambda i: (0, 0)),        # W[512], W[513], bias
        ],
        out_specs=pl.BlockSpec((mt, D_MODEL), lambda i: (i, 0)),
        compiler_params=pltpu.CompilerParams(
            dimension_semantics=("parallel",),      # row tiles are independent
            vmem_limit_bytes=32 * 1024 * 1024,      # headroom on v5e's 16 MiB default
        ),
    )(enc, spc, we, wsb)
    return out


# ----------------------- parameter init (deterministic) ------------------
def init_params(key):
    # PyTorch nn.Linear default init: U(-1/sqrt(fan_in), 1/sqrt(fan_in)), fan_in = 514.
    # Weight stored pre-transposed as (in, out) = (514, 512).
    kw, kb = jax.random.split(key)
    bound = 1.0 / math.sqrt(D_MODEL + 2)
    w_t = jax.random.uniform(kw, (D_MODEL + 2, D_MODEL), jnp.float32, -bound, bound)
    b = jax.random.uniform(kb, (1, D_MODEL), jnp.float32, -bound, bound)
    return (w_t, b)


# ----------------------- pure-JAX reference -------------------------------
def ref_forward(encoding, spread, percent_in, params):
    w_t, b = params
    x = jnp.concatenate(
        [encoding.reshape(-1, D_MODEL),
         spread.reshape(-1, 1),
         percent_in.reshape(-1, 1)], axis=1)           # (N, 514)
    y = x @ w_t + b
    return jnp.where(y > 0, y, LEAKY_SLOPE * y)
    # n_layers == 0 -> no residual stack; dropout p == 0 -> identity.


if __name__ == "__main__":
    key = jax.random.PRNGKey(0)
    k_enc, k_sp, k_pc, k_p = jax.random.split(key, 4)

    B, S = 2, 8                                    # encoding.view(-1, 512) -> N = 16 rows
    encoding = jax.random.normal(k_enc, (B, S, D_MODEL), jnp.float32)
    spread = jax.random.normal(k_sp, (B, S), jnp.float32)
    percent_in = jax.random.normal(k_pc, (B, S), jnp.float32)

    params = init_params(k_p)

    out = encoder_to_others(encoding, spread, percent_in, params)
    out = jax.block_until_ready(out)

    ref = jax.block_until_ready(ref_forward(encoding, spread, percent_in, params))
    np.testing.assert_allclose(np.asarray(out), np.asarray(ref),
                               rtol=1e-4, atol=1e-4)

    print("KERNEL_OK")
</pallas_src>

<mosaic_0001>
module attributes {stable_mosaic.version = 11 : i64} {
  func.func @encoder_to_others_kernel(%arg0: i32, %arg1: memref<16x512xf32, #tpu.memory_space<vmem>>, %arg2: memref<16x2xf32, #tpu.memory_space<vmem>>, %arg3: memref<512x512xf32, #tpu.memory_space<vmem>>, %arg4: memref<3x512xf32, #tpu.memory_space<vmem>>, %arg5: memref<16x512xf32, #tpu.memory_space<vmem>>) attributes {dimension_semantics = [#tpu.dimension_semantics<parallel>], iteration_bounds = array<i64: 1>, scalar_prefetch = 0 : i64, scratch_operands = 0 : i64, tpu.core_type = #tpu.core_type<tc>, window_params = [{transform_indices = @transform_0, window_bounds = array<i64: 16, 512>}, {transform_indices = @transform_1, window_bounds = array<i64: 16, 2>}, {pipeline_mode = #tpu.pipeline_mode<synchronous>, transform_indices = @transform_2, window_bounds = array<i64: 512, 512>}, {pipeline_mode = #tpu.pipeline_mode<synchronous>, transform_indices = @transform_3, window_bounds = array<i64: 3, 512>}, {transform_indices = @transform_4, window_bounds = array<i64: 16, 512>}]} {
    %c0 = arith.constant 0 : index
    %c0_0 = arith.constant 0 : index
    %0 = vector.load %arg2[%c0, %c0_0] : memref<16x2xf32, #tpu.memory_space<vmem>>, vector<16x2xf32>
    %c0_1 = arith.constant 0 : index
    %c0_2 = arith.constant 0 : index
    %1 = vector.load %arg4[%c0_1, %c0_2] : memref<3x512xf32, #tpu.memory_space<vmem>>, vector<3x512xf32>
    %c0_3 = arith.constant 0 : index
    %c0_4 = arith.constant 0 : index
    %2 = vector.load %arg1[%c0_3, %c0_4] : memref<16x512xf32, #tpu.memory_space<vmem>>, vector<16x512xf32>
    %c0_5 = arith.constant 0 : index
    %c0_6 = arith.constant 0 : index
    %3 = vector.load %arg3[%c0_5, %c0_6] : memref<512x512xf32, #tpu.memory_space<vmem>>, vector<512x512xf32>
    %cst = arith.constant dense<0.000000e+00> : vector<16x512xf32>
    %4 = tpu.matmul %2, %3, %cst {dimension_numbers = #tpu.dot_dimension_numbers<[1], [0], [0], [1], [0, 0, 1, 1], [], []>} : vector<16x512xf32>, vector<512x512xf32>, vector<16x512xf32> -> vector<16x512xf32>
    %5 = vector.extract_strided_slice %0 {offsets = [0, 0], sizes = [16, 1], strides = [1, 1]} : vector<16x2xf32> to vector<16x1xf32>
    %6 = vector.extract_strided_slice %1 {offsets = [0, 0], sizes = [1, 512], strides = [1, 1]} : vector<3x512xf32> to vector<1x512xf32>
    %7 = vector.broadcast %5 : vector<16x1xf32> to vector<16x512xf32>
    %8 = vector.broadcast %6 : vector<1x512xf32> to vector<16x512xf32>
    %9 = arith.mulf %7, %8 : vector<16x512xf32>
    %10 = arith.addf %4, %9 : vector<16x512xf32>
    %11 = vector.extract_strided_slice %0 {offsets = [0, 1], sizes = [16, 1], strides = [1, 1]} : vector<16x2xf32> to vector<16x1xf32>
    %12 = vector.extract_strided_slice %1 {offsets = [1, 0], sizes = [1, 512], strides = [1, 1]} : vector<3x512xf32> to vector<1x512xf32>
    %13 = vector.broadcast %11 : vector<16x1xf32> to vector<16x512xf32>
    %14 = vector.broadcast %12 : vector<1x512xf32> to vector<16x512xf32>
    %15 = arith.mulf %13, %14 : vector<16x512xf32>
    %16 = arith.addf %10, %15 : vector<16x512xf32>
    %17 = vector.extract_strided_slice %1 {offsets = [2, 0], sizes = [1, 512], strides = [1, 1]} : vector<3x512xf32> to vector<1x512xf32>
    %18 = vector.broadcast %17 : vector<1x512xf32> to vector<16x512xf32>
    %19 = arith.addf %16, %18 : vector<16x512xf32>
    %cst_7 = arith.constant 0.000000e+00 : f32
    %20 = vector.broadcast %cst_7 : f32 to vector<16x512xf32>
    %21 = arith.cmpf ogt, %19, %20 : vector<16x512xf32>
    %cst_8 = arith.constant 0.00999999977 : f32
    %22 = vector.broadcast %cst_8 : f32 to vector<16x512xf32>
    %23 = arith.mulf %22, %19 : vector<16x512xf32>
    %24 = arith.select %21, %19, %23 : vector<16x512xi1>, vector<16x512xf32>
    %c0_9 = arith.constant 0 : index
    %c0_10 = arith.constant 0 : index
    %25 = vector.load %arg5[%c0_9, %c0_10] : memref<16x512xf32, #tpu.memory_space<vmem>>, vector<16x512xf32>
    tpu.vector_store %arg5[%c0_9, %c0_10], %24 {strides = array<i32>} : memref<16x512xf32, #tpu.memory_space<vmem>>, vector<16x512xf32>,
    return
  }
  func.func @transform_0(%arg0: i32) -> (i32, i32) {
    %c0_i32 = arith.constant 0 : i32
    %c0_i32_0 = arith.constant 0 : i32
    return %arg0, %c0_i32 : i32, i32
  }
  func.func @transform_1(%arg0: i32) -> (i32, i32) {
    %c0_i32 = arith.constant 0 : i32
    %c0_i32_0 = arith.constant 0 : i32
    return %arg0, %c0_i32 : i32, i32
  }
  func.func @transform_2(%arg0: i32) -> (i32, i32) {
    %c0_i32 = arith.constant 0 : i32
    %c0_i32_0 = arith.constant 0 : i32
    %c0_i32_1 = arith.constant 0 : i32
    return %c0_i32, %c0_i32_0 : i32, i32
  }
  func.func @transform_3(%arg0: i32) -> (i32, i32) {
    %c0_i32 = arith.constant 0 : i32
    %c0_i32_0 = arith.constant 0 : i32
    %c0_i32_1 = arith.constant 0 : i32
    return %c0_i32, %c0_i32_0 : i32, i32
  }
  func.func @transform_4(%arg0: i32) -> (i32, i32) {
    %c0_i32 = arith.constant 0 : i32
    %c0_i32_0 = arith.constant 0 : i32
    return %arg0, %c0_i32 : i32, i32
  }
}

</mosaic_0001>

<bundles_post_ra>
// kernel: tpu_custom_call.1
= control target key start
LH: loop header
LB: loop body
LE: loop exit
PB: predicated region body
PF: predicated region fallthrough
CT: control target
= control target key end

     0   :  { %9 = vsyncpa [#allocation3], 0  ;;  %s1058_s0 = inlined_call_operand.hbm [shape: f32[16,512], index: 0, kind: input, shape index: {}]   ;;  %s1059_s1 = inlined_call_operand.vmem [shape: f32[16,2], index: 1, kind: input, shape index: {}]   ;;  %s1060_s2 = inlined_call_operand.hbm [shape: f32[512,512], index: 2, kind: input, shape index: {}]   ;;  %s1061_s3 = inlined_call_operand.vmem [shape: f32[3,512], index: 3, kind: input, shape index: {}]   ;;  %s1062_s4 = inlined_call_operand.hbm [shape: f32[16,512], index: 4, kind: output, shape index: {}]  }
   0x1   :  { %10 = vsyncpa [#allocation6], 0 }
   0x2   :  { %11 = vsyncpa [#allocation4], 0  ;;  %s16_s17 = sshll.u32 %s1058_s0, 4  ;;  %s914_s18 = smov [#allocation2]   ;;  %s17_s17 = int_to_ptr.hbm [resolvable:$true] %s16_s17 }
   0x3   :  { %s18_s19 = sshll.u32 %s914_s18, 4  ;;  %s31_s22 = sshll.u32 %s1060_s2, 4  ;;  %s19_s19 = int_to_ptr.vmem [resolvable:$true] %s18_s19  ;;  %s32_s22 = int_to_ptr.hbm [resolvable:$true] %s31_s22 }
   0x4   :  { %s915_s23 = smov 512   ;;  %s916_s24 = smov 32  }
   0x5   :  { %24 = dma.hbm_to_vmem [thread:$0]  %s17_s17, 1024, %s19_s19, [#allocation3], %s915_s23, %s915_s23, %s916_s24  }
   0x6   :  { %s917_s25 = smov [#allocation5]  }
   0x7   :  { %s33_s26 = sshll.u32 %s917_s25, 4  ;;  %s34_s26 = int_to_ptr.vmem [resolvable:$true] %s33_s26 }
   0x8   :  { %39 = dma.hbm_to_vmem [thread:$0]  %s32_s22, 32768, %s34_s26, [#allocation6], %s915_s23, %s915_s23, %s916_s24  }
   0x9   :  { %908 = dma.done.wait [#allocation3], 1024  }
   0xa   :  { %909 = vsyncadd [#allocation3], 4294966272 }
   0xb   :  { %910 = dma.done.wait [#allocation6], 32768  }
   0xc   :  { %911 = vsyncadd [#allocation6], 4294934528  ;;  %v122_v0 = vld [vmem:[#allocation5 + $0x1e0] sm:$0xff]  ;;  %v123_v62 = vld [vmem:[#allocation5 + $0x1e8] sm:$0xff]  ;;  %s812_s9 = sshll.u32 %s1062_s4, 4  ;;  %s813_s9 = int_to_ptr.hbm [resolvable:$true] %s812_s9 }
   0xd   :  { %v250_v1 = vld [vmem:[#allocation5 + $0x5e0] sm:$0xff]  ;;  %350 = vmatpush.msra.mxu0 %v122_v0  ;;  %v251_v63 = vld [vmem:[#allocation5 + $0x5e8] sm:$0xff] }
   0xe   :  { %v118_v2 = vld [vmem:[#allocation5 + $0x1c0] sm:$0xff]  ;;  %396 = vmatpush.msra.mxu2 %v250_v1 }
   0xf   :  { %v186_v3 = vld [vmem:[#allocation5 + $0x3e0] sm:$0xff]  ;;  %351 = vmatpush.msra.mxu0 %v118_v2  ;;  %v119_v2 = vld [vmem:[#allocation5 + $0x1c8] sm:$0xff] }
  0x10   :  { %v246_v4 = vld [vmem:[#allocation5 + $0x5c0] sm:$0xff]  ;;  %373 = vmatpush.msra.mxu1 %v186_v3  ;;  %v187_v3 = vld [vmem:[#allocation5 + $0x3e8] sm:$0xff] }
  0x11   :  { %v314_v5 = vld [vmem:[#allocation5 + $0x7e0] sm:$0xff]  ;;  %397 = vmatpush.msra.mxu2 %v246_v4  ;;  %v247_v4 = vld [vmem:[#allocation5 + $0x5c8] sm:$0xff] }
  0x12   :  { %419 = vmatpush.msra.mxu3 %v314_v5  ;;  %v114_v6 = vld [vmem:[#allocation5 + $0x1a0] sm:$0xff]  ;;  %v315_v5 = vld [vmem:[#allocation5 + $0x7e8] sm:$0xff] }
  0x13   :  { %v182_v7 = vld [vmem:[#allocation5 + $0x3c0] sm:$0xff]  ;;  %352 = vmatpush.msra.mxu0 %v114_v6  ;;  %v115_v6 = vld [vmem:[#allocation5 + $0x1a8] sm:$0xff] }
  0x14   :  { %v242_v8 = vld [vmem:[#allocation5 + $0x5a0] sm:$0xff]  ;;  %374 = vmatpush.msra.mxu1 %v182_v7  ;;  %v183_v7 = vld [vmem:[#allocation5 + $0x3c8] sm:$0xff] }
  0x15   :  { %v310_v9 = vld [vmem:[#allocation5 + $0x7c0] sm:$0xff]  ;;  %398 = vmatpush.msra.mxu2 %v242_v8  ;;  %v243_v8 = vld [vmem:[#allocation5 + $0x5a8] sm:$0xff] }
  0x16   :  { %v178_v10 = vld [vmem:[#allocation5 + $0x3a0] sm:$0xff]  ;;  %420 = vmatpush.msra.mxu3 %v310_v9  ;;  %v311_v9 = vld [vmem:[#allocation5 + $0x7c8] sm:$0xff] }
  0x17   :  { %v110_v11 = vld [vmem:[#allocation5 + $0x180] sm:$0xff]  ;;  %375 = vmatpush.msra.mxu1 %v178_v10  ;;  %v111_v10 = vld [vmem:[#allocation5 + $0x188] sm:$0xff] }
  0x18   :  { %v238_v12 = vld [vmem:[#allocation5 + $0x580] sm:$0xff]  ;;  %353 = vmatpush.msra.mxu0 %v110_v11  ;;  %v179_v11 = vld [vmem:[#allocation5 + $0x3a8] sm:$0xff] }
  0x19   :  { %v306_v13 = vld [vmem:[#allocation5 + $0x7a0] sm:$0xff]  ;;  %399 = vmatpush.msra.mxu2 %v238_v12  ;;  %v239_v12 = vld [vmem:[#allocation5 + $0x588] sm:$0xff] }
  0x1a   :  { %v174_v14 = vld [vmem:[#allocation5 + $0x380] sm:$0xff]  ;;  %421 = vmatpush.msra.mxu3 %v306_v13  ;;  %v307_v13 = vld [vmem:[#allocation5 + $0x7a8] sm:$0xff] }
  0x1b   :  { %v302_v15 = vld [vmem:[#allocation5 + $0x780] sm:$0xff]  ;;  %376 = vmatpush.msra.mxu1 %v174_v14  ;;  %v107_v14 = vld [vmem:[#allocation5 + $0x168] sm:$0xff] }
  0x1c   :  { %v106_v16 = vld [vmem:[#allocation5 + $0x160] sm:$0xff]  ;;  %422 = vmatpush.msra.mxu3 %v302_v15  ;;  %v175_v15 = vld [vmem:[#allocation5 + $0x388] sm:$0xff] }
  0x1d   :  { %v234_v17 = vld [vmem:[#allocation5 + $0x560] sm:$0xff]  ;;  %354 = vmatpush.msra.mxu0 %v106_v16  ;;  %v235_v16 = vld [vmem:[#allocation5 + $0x568] sm:$0xff] }
  0x1e   :  { %v170_v18 = vld [vmem:[#allocation5 + $0x360] sm:$0xff]  ;;  %400 = vmatpush.msra.mxu2 %v234_v17  ;;  %v303_v17 = vld [vmem:[#allocation5 + $0x788] sm:$0xff] }
  0x1f   :  { %v298_v19 = vld [vmem:[#allocation5 + $0x760] sm:$0xff]  ;;  %377 = vmatpush.msra.mxu1 %v170_v18  ;;  %v103_v18 = vld [vmem:[#allocation5 + $0x148] sm:$0xff] }
  0x20   :  { %v102_v20 = vld [vmem:[#allocation5 + $0x140] sm:$0xff]  ;;  %423 = vmatpush.msra.mxu3 %v298_v19  ;;  %v171_v19 = vld [vmem:[#allocation5 + $0x368] sm:$0xff] }
  0x21   :  { %v230_v21 = vld [vmem:[#allocation5 + $0x540] sm:$0xff]  ;;  %355 = vmatpush.msra.mxu0 %v102_v20  ;;  %v231_v20 = vld [vmem:[#allocation5 + $0x548] sm:$0xff] }
  0x22   :  { %v166_v22 = vld [vmem:[#allocation5 + $0x340] sm:$0xff]  ;;  %401 = vmatpush.msra.mxu2 %v230_v21  ;;  %v299_v21 = vld [vmem:[#allocation5 + $0x768] sm:$0xff] }
  0x23   :  { %v294_v23 = vld [vmem:[#allocation5 + $0x740] sm:$0xff]  ;;  %378 = vmatpush.msra.mxu1 %v166_v22  ;;  %v99_v22 = vld [vmem:[#allocation5 + $0x128] sm:$0xff] }
  0x24   :  { %v98_v24 = vld [vmem:[#allocation5 + $0x120] sm:$0xff]  ;;  %424 = vmatpush.msra.mxu3 %v294_v23  ;;  %v167_v23 = vld [vmem:[#allocation5 + $0x348] sm:$0xff] }
  0x25   :  { %v226_v25 = vld [vmem:[#allocation5 + $0x520] sm:$0xff]  ;;  %356 = vmatpush.msra.mxu0 %v98_v24  ;;  %v227_v24 = vld [vmem:[#allocation5 + $0x528] sm:$0xff] }
  0x26   :  { %v162_v26 = vld [vmem:[#allocation5 + $0x320] sm:$0xff]  ;;  %402 = vmatpush.msra.mxu2 %v226_v25  ;;  %v295_v25 = vld [vmem:[#allocation5 + $0x748] sm:$0xff] }
  0x27   :  { %v290_v27 = vld [vmem:[#allocation5 + $0x720] sm:$0xff]  ;;  %379 = vmatpush.msra.mxu1 %v162_v26  ;;  %v95_v26 = vld [vmem:[#allocation5 + $0x108] sm:$0xff] }
  0x28   :  { %v94_v28 = vld [vmem:[#allocation5 + $0x100] sm:$0xff]  ;;  %425 = vmatpush.msra.mxu3 %v290_v27  ;;  %v163_v27 = vld [vmem:[#allocation5 + $0x328] sm:$0xff] }
  0x29   :  { %v222_v29 = vld [vmem:[#allocation5 + $0x500] sm:$0xff]  ;;  %357 = vmatpush.msra.mxu0 %v94_v28  ;;  %v223_v28 = vld [vmem:[#allocation5 + $0x508] sm:$0xff] }
  0x2a   :  { %v158_v30 = vld [vmem:[#allocation5 + $0x300] sm:$0xff]  ;;  %403 = vmatpush.msra.mxu2 %v222_v29  ;;  %v291_v29 = vld [vmem:[#allocation5 + $0x728] sm:$0xff] }
  0x2b   :  { %v286_v31 = vld [vmem:[#allocation5 + $0x700] sm:$0xff]  ;;  %380 = vmatpush.msra.mxu1 %v158_v30  ;;  %v91_v30 = vld [vmem:[#allocation5 + $0xe8] sm:$0xff] }
  0x2c   :  { %v90_v32 = vld [vmem:[#allocation5 + $0xe0] sm:$0xff]  ;;  %426 = vmatpush.msra.mxu3 %v286_v31  ;;  %v159_v31 = vld [vmem:[#allocation5 + $0x308] sm:$0xff] }
  0x2d   :  { %v218_v33 = vld [vmem:[#allocation5 + $0x4e0] sm:$0xff]  ;;  %358 = vmatpush.msra.mxu0 %v90_v32  ;;  %v219_v32 = vld [vmem:[#allocation5 + $0x4e8] sm:$0xff] }
  0x2e   :  { %v154_v34 = vld [vmem:[#allocation5 + $0x2e0] sm:$0xff]  ;;  %404 = vmatpush.msra.mxu2 %v218_v33  ;;  %v287_v33 = vld [vmem:[#allocation5 + $0x708] sm:$0xff] }
  0x2f   :  { %v282_v35 = vld [vmem:[#allocation5 + $0x6e0] sm:$0xff]  ;;  %381 = vmatpush.msra.mxu1 %v154_v34  ;;  %v87_v34 = vld [vmem:[#allocation5 + $0xc8] sm:$0xff] }
  0x30   :  { %v86_v36 = vld [vmem:[#allocation5 + $0xc0] sm:$0xff]  ;;  %427 = vmatpush.msra.mxu3 %v282_v35  ;;  %v155_v35 = vld [vmem:[#allocation5 + $0x2e8] sm:$0xff] }
  0x31   :  { %v214_v37 = vld [vmem:[#allocation5 + $0x4c0] sm:$0xff]  ;;  %359 = vmatpush.msra.mxu0 %v86_v36  ;;  %v215_v36 = vld [vmem:[#allocation5 + $0x4c8] sm:$0xff] }
  0x32   :  { %v150_v38 = vld [vmem:[#allocation5 + $0x2c0] sm:$0xff]  ;;  %405 = vmatpush.msra.mxu2 %v214_v37  ;;  %v283_v37 = vld [vmem:[#allocation5 + $0x6e8] sm:$0xff] }
  0x33   :  { %v278_v39 = vld [vmem:[#allocation5 + $0x6c0] sm:$0xff]  ;;  %382 = vmatpush.msra.mxu1 %v150_v38  ;;  %v83_v38 = vld [vmem:[#allocation5 + $0xa8] sm:$0xff] }
  0x34   :  { %v82_v40 = vld [vmem:[#allocation5 + $0xa0] sm:$0xff]  ;;  %428 = vmatpush.msra.mxu3 %v278_v39  ;;  %v151_v39 = vld [vmem:[#allocation5 + $0x2c8] sm:$0xff] }
  0x35   :  { %v210_v41 = vld [vmem:[#allocation5 + $0x4a0] sm:$0xff]  ;;  %360 = vmatpush.msra.mxu0 %v82_v40  ;;  %v211_v40 = vld [vmem:[#allocation5 + $0x4a8] sm:$0xff] }
  0x36   :  { %v146_v42 = vld [vmem:[#allocation5 + $0x2a0] sm:$0xff]  ;;  %406 = vmatpush.msra.mxu2 %v210_v41  ;;  %v279_v41 = vld [vmem:[#allocation5 + $0x6c8] sm:$0xff] }
  0x37   :  { %v274_v43 = vld [vmem:[#allocation5 + $0x6a0] sm:$0xff]  ;;  %383 = vmatpush.msra.mxu1 %v146_v42  ;;  %v79_v42 = vld [vmem:[#allocation5 + $0x88] sm:$0xff] }
  0x38   :  { %v78_v44 = vld [vmem:[#allocation5 + $0x80] sm:$0xff]  ;;  %429 = vmatpush.msra.mxu3 %v274_v43  ;;  %v147_v43 = vld [vmem:[#allocation5 + $0x2a8] sm:$0xff] }
  0x39   :  { %v206_v45 = vld [vmem:[#allocation5 + $0x480] sm:$0xff]  ;;  %361 = vmatpush.msra.mxu0 %v78_v44  ;;  %v207_v44 = vld [vmem:[#allocation5 + $0x488] sm:$0xff] }
  0x3a   :  { %v142_v46 = vld [vmem:[#allocation5 + $0x280] sm:$0xff]  ;;  %407 = vmatpush.msra.mxu2 %v206_v45  ;;  %v275_v45 = vld [vmem:[#allocation5 + $0x6a8] sm:$0xff] }
  0x3b   :  { %v270_v47 = vld [vmem:[#allocation5 + $0x680] sm:$0xff]  ;;  %384 = vmatpush.msra.mxu1 %v142_v46  ;;  %v75_v46 = vld [vmem:[#allocation5 + $0x68] sm:$0xff] }
  0x3c   :  { %v74_v48 = vld [vmem:[#allocation5 + $0x60] sm:$0xff]  ;;  %430 = vmatpush.msra.mxu3 %v270_v47  ;;  %v143_v47 = vld [vmem:[#allocation5 + $0x288] sm:$0xff] }
  0x3d   :  { %v202_v49 = vld [vmem:[#allocation5 + $0x460] sm:$0xff]  ;;  %362 = vmatpush.msra.mxu0 %v74_v48  ;;  %v203_v48 = vld [vmem:[#allocation5 + $0x468] sm:$0xff] }
  0x3e   :  { %v138_v50 = vld [vmem:[#allocation5 + $0x260] sm:$0xff]  ;;  %408 = vmatpush.msra.mxu2 %v202_v49  ;;  %v271_v49 = vld [vmem:[#allocation5 + $0x688] sm:$0xff] }
  0x3f   :  { %v266_v51 = vld [vmem:[#allocation5 + $0x660] sm:$0xff]  ;;  %385 = vmatpush.msra.mxu1 %v138_v50  ;;  %v71_v50 = vld [vmem:[#allocation5 + $0x48] sm:$0xff] }
  0x40   :  { %v70_v52 = vld [vmem:[#allocation5 + $0x40] sm:$0xff]  ;;  %431 = vmatpush.msra.mxu3 %v266_v51  ;;  %v139_v51 = vld [vmem:[#allocation5 + $0x268] sm:$0xff] }
  0x41   :  { %v198_v53 = vld [vmem:[#allocation5 + $0x440] sm:$0xff]  ;;  %363 = vmatpush.msra.mxu0 %v70_v52  ;;  %v199_v52 = vld [vmem:[#allocation5 + $0x448] sm:$0xff] }
  0x42   :  { %v134_v54 = vld [vmem:[#allocation5 + $0x240] sm:$0xff]  ;;  %409 = vmatpush.msra.mxu2 %v198_v53  ;;  %v267_v53 = vld [vmem:[#allocation5 + $0x668] sm:$0xff] }
  0x43   :  { %v262_v55 = vld [vmem:[#allocation5 + $0x640] sm:$0xff]  ;;  %386 = vmatpush.msra.mxu1 %v134_v54  ;;  %v67_v54 = vld [vmem:[#allocation5 + $0x28] sm:$0xff] }
  0x44   :  { %v66_v56 = vld [vmem:[#allocation5 + $0x20] sm:$0xff]  ;;  %432 = vmatpush.msra.mxu3 %v262_v55  ;;  %v135_v55 = vld [vmem:[#allocation5 + $0x248] sm:$0xff] }
  0x45   :  { %v194_v57 = vld [vmem:[#allocation5 + $0x420] sm:$0xff]  ;;  %364 = vmatpush.msra.mxu0 %v66_v56  ;;  %v195_v56 = vld [vmem:[#allocation5 + $0x428] sm:$0xff] }
  0x46   :  { %v130_v58 = vld [vmem:[#allocation5 + $0x220] sm:$0xff]  ;;  %410 = vmatpush.msra.mxu2 %v194_v57  ;;  %v263_v57 = vld [vmem:[#allocation5 + $0x648] sm:$0xff] }
  0x47   :  { %v258_v59 = vld [vmem:[#allocation5 + $0x620] sm:$0xff]  ;;  %387 = vmatpush.msra.mxu1 %v130_v58  ;;  %v958_v58 = vld [vmem:[#allocation2 + $0x10] sm:$0xff] }
  0x48   :  { %v62_v60 = vld [vmem:[#allocation5] sm:$0xff]  ;;  %433 = vmatpush.msra.mxu3 %v258_v59  ;;  %v63_v59 = vld [vmem:[#allocation5 + $0x8] sm:$0xff] }
  0x49   :  { %v190_v61 = vld [vmem:[#allocation5 + $0x400] sm:$0xff]  ;;  %365 = vmatpush.msra.mxu0 %v62_v60  ;;  %v131_v60 = vld [vmem:[#allocation5 + $0x228] sm:$0xff] }
  0x4a   :  { %v126_v0 = vld [vmem:[#allocation5 + $0x200] sm:$0xff]  ;;  %411 = vmatpush.msra.mxu2 %v190_v61  ;;  %v191_v61 = vld [vmem:[#allocation5 + $0x408] sm:$0xff] }
  0x4b   :  { %v254_v1 = vld [vmem:[#allocation5 + $0x600] sm:$0xff]  ;;  %442 = vmatpush.msrb.mxu0 %v123_v62  ;;  %388 = vmatpush.msra.mxu1 %v126_v0  ;;  %v259_v62 = vld [vmem:[#allocation5 + $0x628] sm:$0xff]  ;;  %v963_v0 = vld [vmem:[#allocation2 + $0x18] sm:$0xff] }
  0x4c   :  { %488 = vmatpush.msrb.mxu2 %v251_v63  ;;  %434 = vmatpush.msra.mxu3 %v254_v1  ;;  %v960_v63 = vld [vmem:[#allocation2] sm:$0xff]  ;;  %v124_v1 = vld [vmem:[#allocation5 + $0x1f0] sm:$0xff] }
  0x4d   :  { %443 = vmatpush.msrb.mxu0 %v119_v2  ;;  %465 = vmatpush.msrb.mxu1 %v187_v3  ;;  %v252_v2 = vld [vmem:[#allocation5 + $0x5f0] sm:$0xff]  ;;  %v127_v3 = vld [vmem:[#allocation5 + $0x208] sm:$0xff] }
  0x4e   :  { %489 = vmatpush.msrb.mxu2 %v247_v4  ;;  %511 = vmatpush.msrb.mxu3 %v315_v5  ;;  %v255_v4 = vld [vmem:[#allocation5 + $0x608] sm:$0xff] }
  0x4f   :  { %444 = vmatpush.msrb.mxu0 %v115_v6  ;;  %466 = vmatpush.msrb.mxu1 %v183_v7  ;;  %v966_v5 = vld [vmem:[#allocation2 + $0x8] sm:$0xff]  ;;  %v120_v6 = vld [vmem:[#allocation5 + $0x1d0] sm:$0xff] }
  0x50   :  { %490 = vmatpush.msrb.mxu2 %v243_v8  ;;  %512 = vmatpush.msrb.mxu3 %v311_v9  ;;  %v188_v7 = vld [vmem:[#allocation5 + $0x3f0] sm:$0xff] }
  0x51   :  { %445 = vmatpush.msrb.mxu0 %v111_v10  ;;  %467 = vmatpush.msrb.mxu1 %v179_v11  ;;  %v248_v8 = vld [vmem:[#allocation5 + $0x5d0] sm:$0xff] }
  0x52   :  { %491 = vmatpush.msrb.mxu2 %v239_v12  ;;  %513 = vmatpush.msrb.mxu3 %v307_v13  ;;  %v316_v9 = vld [vmem:[#allocation5 + $0x7f0] sm:$0xff] }
  0x53   :  { %446 = vmatpush.msrb.mxu0 %v107_v14  ;;  %468 = vmatpush.msrb.mxu1 %v175_v15  ;;  %v116_v10 = vld [vmem:[#allocation5 + $0x1b0] sm:$0xff] }
  0x54   :  { %492 = vmatpush.msrb.mxu2 %v235_v16  ;;  %514 = vmatpush.msrb.mxu3 %v303_v17  ;;  %v184_v11 = vld [vmem:[#allocation5 + $0x3d0] sm:$0xff] }
  0x55   :  { %447 = vmatpush.msrb.mxu0 %v103_v18  ;;  %469 = vmatpush.msrb.mxu1 %v171_v19  ;;  %v244_v12 = vld [vmem:[#allocation5 + $0x5b0] sm:$0xff] }
  0x56   :  { %493 = vmatpush.msrb.mxu2 %v231_v20  ;;  %515 = vmatpush.msrb.mxu3 %v299_v21  ;;  %v312_v13 = vld [vmem:[#allocation5 + $0x7d0] sm:$0xff] }
  0x57   :  { %448 = vmatpush.msrb.mxu0 %v99_v22  ;;  %470 = vmatpush.msrb.mxu1 %v167_v23  ;;  %v112_v14 = vld [vmem:[#allocation5 + $0x190] sm:$0xff]  ;;  %v50_v22 = vld [vmem:[%s1059_s1] sm:$0xff]  ;;  %v918_v23 = vmov 0  }
  0x58   :  { %494 = vmatpush.msrb.mxu2 %v227_v24  ;;  %516 = vmatpush.msrb.mxu3 %v295_v25  ;;  %v180_v15 = vld [vmem:[#allocation5 + $0x3b0] sm:$0xff] }
  0x59   :  { %449 = vmatpush.msrb.mxu0 %v95_v26  ;;  %471 = vmatpush.msrb.mxu1 %v163_v27  ;;  %v240_v16 = vld [vmem:[#allocation5 + $0x590] sm:$0xff] }
  0x5a   :  { %495 = vmatpush.msrb.mxu2 %v223_v28  ;;  %517 = vmatpush.msrb.mxu3 %v291_v29  ;;  %v308_v17 = vld [vmem:[#allocation5 + $0x7b0] sm:$0xff] }
  0x5b   :  { %450 = vmatpush.msrb.mxu0 %v91_v30  ;;  %472 = vmatpush.msrb.mxu1 %v159_v31  ;;  %v108_v18 = vld [vmem:[#allocation5 + $0x170] sm:$0xff] }
  0x5c   :  { %496 = vmatpush.msrb.mxu2 %v219_v32  ;;  %518 = vmatpush.msrb.mxu3 %v287_v33  ;;  %v176_v19 = vld [vmem:[#allocation5 + $0x390] sm:$0xff] }
  0x5d   :  { %451 = vmatpush.msrb.mxu0 %v87_v34  ;;  %473 = vmatpush.msrb.mxu1 %v155_v35  ;;  %v236_v20 = vld [vmem:[#allocation5 + $0x570] sm:$0xff] }
  0x5e   :  { %497 = vmatpush.msrb.mxu2 %v215_v36  ;;  %519 = vmatpush.msrb.mxu3 %v283_v37  ;;  %v304_v21 = vld [vmem:[#allocation5 + $0x790] sm:$0xff] }
  0x5f   :  { %452 = vmatpush.msrb.mxu0 %v83_v38  ;;  %474 = vmatpush.msrb.mxu1 %v151_v39  ;;  %v104_v24 = vld [vmem:[#allocation5 + $0x150] sm:$0xff] }
  0x60   :  { %498 = vmatpush.msrb.mxu2 %v211_v40  ;;  %520 = vmatpush.msrb.mxu3 %v279_v41  ;;  %v172_v25 = vld [vmem:[#allocation5 + $0x370] sm:$0xff]  ;;  %v919_v40 = vmov 1  }
  0x61   :  { %453 = vmatpush.msrb.mxu0 %v79_v42  ;;  %475 = vmatpush.msrb.mxu1 %v147_v43  ;;  %v232_v26 = vld [vmem:[#allocation5 + $0x550] sm:$0xff] }
  0x62   :  { %499 = vmatpush.msrb.mxu2 %v207_v44  ;;  %521 = vmatpush.msrb.mxu3 %v275_v45  ;;  %v300_v27 = vld [vmem:[#allocation5 + $0x770] sm:$0xff] }
  0x63   :  { %454 = vmatpush.msrb.mxu0 %v75_v46  ;;  %476 = vmatpush.msrb.mxu1 %v143_v47  ;;  %v100_v28 = vld [vmem:[#allocation5 + $0x130] sm:$0xff] }
  0x64   :  { %500 = vmatpush.msrb.mxu2 %v203_v48  ;;  %522 = vmatpush.msrb.mxu3 %v271_v49  ;;  %v168_v29 = vld [vmem:[#allocation5 + $0x350] sm:$0xff] }
  0x65   :  { %455 = vmatpush.msrb.mxu0 %v71_v50  ;;  %477 = vmatpush.msrb.mxu1 %v139_v51  ;;  %v228_v30 = vld [vmem:[#allocation5 + $0x530] sm:$0xff]  ;;  %v976_v50 = vld [vmem:[#allocation2 + $0x20] sm:$0xff]  ;;  %v979_v51 = vld [vmem:[#allocation2 + $0x38] sm:$0xff] }
  0x66   :  { %501 = vmatpush.msrb.mxu2 %v199_v52  ;;  %523 = vmatpush.msrb.mxu3 %v267_v53  ;;  %v296_v31 = vld [vmem:[#allocation5 + $0x750] sm:$0xff] }
  0x67   :  { %456 = vmatpush.msrb.mxu0 %v67_v54  ;;  %478 = vmatpush.msrb.mxu1 %v135_v55  ;;  %v96_v32 = vld [vmem:[#allocation5 + $0x110] sm:$0xff] }
  0x68   :  { %502 = vmatpush.msrb.mxu2 %v195_v56  ;;  %524 = vmatpush.msrb.mxu3 %v263_v57  ;;  %v164_v33 = vld [vmem:[#allocation5 + $0x330] sm:$0xff]  ;;  %v982_v56 = vld [vmem:[#allocation2 + $0x28] sm:$0xff] }
  0x69   :  { %412 = vmatmul.f32.vlgmr.msra.gmra.mxu2 %v958_v58  ;;  %457 = vmatpush.msrb.mxu0 %v63_v59  ;;  %v224_v34 = vld [vmem:[#allocation5 + $0x510] sm:$0xff] }
  0x6a   :  { %479 = vmatpush.msrb.mxu1 %v131_v60  ;;  %503 = vmatpush.msrb.mxu2 %v191_v61  ;;  %v292_v35 = vld [vmem:[#allocation5 + $0x730] sm:$0xff] }
  0x6b   :  { %525 = vmatpush.msrb.mxu3 %v259_v62  ;;  %366 = vmatmul.f32.vlgmr.msra.gmra.mxu0 %v960_v63  ;;  %v92_v36 = vld [vmem:[#allocation5 + $0xf0] sm:$0xff] }
  0x6c   :  { %435 = vmatmul.f32.vlgmr.msra.gmra.mxu3 %v963_v0  ;;  %534 = vmatpush.msra.mxu0 %v124_v1  ;;  %v160_v37 = vld [vmem:[#allocation5 + $0x310] sm:$0xff] }
  0x6d   :  { %580 = vmatpush.msra.mxu2 %v252_v2  ;;  %480 = vmatpush.msrb.mxu1 %v127_v3  ;;  %v220_v38 = vld [vmem:[#allocation5 + $0x4f0] sm:$0xff] }
  0x6e   :  { %526 = vmatpush.msrb.mxu3 %v255_v4  ;;  %389 = vmatmul.f32.vlgmr.msra.gmra.mxu1 %v966_v5  ;;  %v288_v39 = vld [vmem:[#allocation5 + $0x710] sm:$0xff] }
  0x6f   :  { %535 = vmatpush.msra.mxu0 %v120_v6  ;;  %557 = vmatpush.msra.mxu1 %v188_v7  ;;  %v88_v41 = vld [vmem:[#allocation5 + $0xd0] sm:$0xff] }
  0x70   :  { %581 = vmatpush.msra.mxu2 %v248_v8  ;;  %603 = vmatpush.msra.mxu3 %v316_v9  ;;  %v156_v42 = vld [vmem:[#allocation5 + $0x2f0] sm:$0xff] }
  0x71   :  { %536 = vmatpush.msra.mxu0 %v116_v10  ;;  %558 = vmatpush.msra.mxu1 %v184_v11  ;;  %v216_v43 = vld [vmem:[#allocation5 + $0x4d0] sm:$0xff] }
  0x72   :  { %582 = vmatpush.msra.mxu2 %v244_v12  ;;  %604 = vmatpush.msra.mxu3 %v312_v13  ;;  %v284_v44 = vld [vmem:[#allocation5 + $0x6f0] sm:$0xff]  ;;  %v125_v13 = vld [vmem:[#allocation5 + $0x1f8] sm:$0xff] }
  0x73   :  { %537 = vmatpush.msra.mxu0 %v112_v14  ;;  %559 = vmatpush.msra.mxu1 %v180_v15  ;;  %v974_v45 = vld [vmem:[#allocation2 + $0x30] sm:$0xff]  ;;  %v253_v14 = vld [vmem:[#allocation5 + $0x5f8] sm:$0xff]  ;;  %v51_v15 = vld [vmem:[%s1059_s1 + $0x8] sm:$0xff] }
  0x74   :  { %583 = vmatpush.msra.mxu2 %v240_v16  ;;  %605 = vmatpush.msra.mxu3 %v308_v17  ;;  %v84_v46 = vld [vmem:[#allocation5 + $0xb0] sm:$0xff] }
  0x75   :  { %833 = vset.pattern.permute.xlu0 %v918_v23  ;;  %538 = vmatpush.msra.mxu0 %v108_v18  ;;  %v152_v47 = vld [vmem:[#allocation5 + $0x2d0] sm:$0xff]  ;;  %v121_v18 = vld [vmem:[#allocation5 + $0x1d8] sm:$0xff] }
  0x76   :  { %560 = vmatpush.msra.mxu1 %v176_v19  ;;  %584 = vmatpush.msra.mxu2 %v236_v20  ;;  %v212_v48 = vld [vmem:[#allocation5 + $0x4b0] sm:$0xff]  ;;  %v189_v19 = vld [vmem:[#allocation5 + $0x3f8] sm:$0xff] }
  0x77   :  { %606 = vmatpush.msra.mxu3 %v304_v21  ;;  %320 = vperm.xlu0 %833, %v50_v22   ;;  %v280_v49 = vld [vmem:[#allocation5 + $0x6d0] sm:$0xff]  ;;  %v249_v20 = vld [vmem:[#allocation5 + $0x5d8] sm:$0xff] }
  0x78   :  { %539 = vmatpush.msra.mxu0 %v104_v24  ;;  %561 = vmatpush.msra.mxu1 %v172_v25  ;;  %v80_v52 = vld [vmem:[#allocation5 + $0x90] sm:$0xff]  ;;  %v317_v21 = vld [vmem:[#allocation5 + $0x7f8] sm:$0xff] }
  0x79   :  { %585 = vmatpush.msra.mxu2 %v232_v26  ;;  %607 = vmatpush.msra.mxu3 %v300_v27  ;;  %v148_v53 = vld [vmem:[#allocation5 + $0x2b0] sm:$0xff]  ;;  %v185_v23 = vld [vmem:[#allocation5 + $0x3d8] sm:$0xff] }
  0x7a   :  { %540 = vmatpush.msra.mxu0 %v100_v28  ;;  %562 = vmatpush.msra.mxu1 %v168_v29  ;;  %v208_v54 = vld [vmem:[#allocation5 + $0x490] sm:$0xff]  ;;  %v245_v24 = vld [vmem:[#allocation5 + $0x5b8] sm:$0xff] }
  0x7b   :  { %586 = vmatpush.msra.mxu2 %v228_v30  ;;  %608 = vmatpush.msra.mxu3 %v296_v31  ;;  %v276_v55 = vld [vmem:[#allocation5 + $0x6b0] sm:$0xff]  ;;  %v313_v25 = vld [vmem:[#allocation5 + $0x7d8] sm:$0xff] }
  0x7c   :  { %541 = vmatpush.msra.mxu0 %v96_v32  ;;  %563 = vmatpush.msra.mxu1 %v164_v33  ;;  %v76_v57 = vld [vmem:[#allocation5 + $0x70] sm:$0xff]  ;;  %v113_v26 = vld [vmem:[#allocation5 + $0x198] sm:$0xff] }
  0x7d   :  { %587 = vmatpush.msra.mxu2 %v224_v34  ;;  %609 = vmatpush.msra.mxu3 %v292_v35  ;;  %v144_v59 = vld [vmem:[#allocation5 + $0x290] sm:$0xff]  ;;  %v181_v27 = vld [vmem:[#allocation5 + $0x3b8] sm:$0xff] }
  0x7e   :  { %834 = vset.pattern.permute.xlu1 %v919_v40  ;;  %542 = vmatpush.msra.mxu0 %v92_v36  ;;  %v204_v60 = vld [vmem:[#allocation5 + $0x470] sm:$0xff]  ;;  %v241_v28 = vld [vmem:[#allocation5 + $0x598] sm:$0xff] }
  0x7f   :  { %564 = vmatpush.msra.mxu1 %v160_v37  ;;  %588 = vmatpush.msra.mxu2 %v220_v38  ;;  %v272_v61 = vld [vmem:[#allocation5 + $0x690] sm:$0xff]  ;;  %v309_v29 = vld [vmem:[#allocation5 + $0x7b8] sm:$0xff] }
  0x80   :  { %610 = vmatpush.msra.mxu3 %v288_v39  ;;  %719 = vperm.xlu1 %834, %v50_v22   ;;  %v72_v62 = vld [vmem:[#allocation5 + $0x50] sm:$0xff]  ;;  %v117_v22 = vld [vmem:[#allocation5 + $0x1b8] sm:$0xff] }
  0x81   :  { %543 = vmatpush.msra.mxu0 %v88_v41  ;;  %565 = vmatpush.msra.mxu1 %v156_v42  ;;  %v140_v1 = vld [vmem:[#allocation5 + $0x270] sm:$0xff]  ;;  %v109_v30 = vld [vmem:[#allocation5 + $0x178] sm:$0xff] }
  0x82   :  { %589 = vmatpush.msra.mxu2 %v216_v43  ;;  %611 = vmatpush.msra.mxu3 %v284_v44  ;;  %v200_v2 = vld [vmem:[#allocation5 + $0x450] sm:$0xff]  ;;  %v177_v31 = vld [vmem:[#allocation5 + $0x398] sm:$0xff] }
  0x83   :  { %415 = vmatmul.f32.gmra.mxu2 %v974_v45  ;;  %544 = vmatpush.msra.mxu0 %v84_v46  ;;  %v268_v3 = vld [vmem:[#allocation5 + $0x670] sm:$0xff]  ;;  %v237_v32 = vld [vmem:[#allocation5 + $0x578] sm:$0xff] }
  0x84   :  { %566 = vmatpush.msra.mxu1 %v152_v47  ;;  %590 = vmatpush.msra.mxu2 %v212_v48  ;;  %v68_v4 = vld [vmem:[#allocation5 + $0x30] sm:$0xff]  ;;  %v305_v33 = vld [vmem:[#allocation5 + $0x798] sm:$0xff] }
  0x85   :  { %612 = vmatpush.msra.mxu3 %v280_v49  ;;  %369 = vmatmul.f32.gmra.mxu0 %v976_v50  ;;  %v136_v6 = vld [vmem:[#allocation5 + $0x250] sm:$0xff]  ;;  %v105_v34 = vld [vmem:[#allocation5 + $0x158] sm:$0xff] }
  0x86   :  { %438 = vmatmul.f32.gmra.mxu3 %v979_v51  ;;  %545 = vmatpush.msra.mxu0 %v80_v52  ;;  %v196_v7 = vld [vmem:[#allocation5 + $0x430] sm:$0xff]  ;;  %v173_v35 = vld [vmem:[#allocation5 + $0x378] sm:$0xff] }
  0x87   :  { %567 = vmatpush.msra.mxu1 %v148_v53  ;;  %591 = vmatpush.msra.mxu2 %v208_v54  ;;  %v264_v8 = vld [vmem:[#allocation5 + $0x650] sm:$0xff]  ;;  %v233_v36 = vld [vmem:[#allocation5 + $0x558] sm:$0xff] }
  0x88   :  { %613 = vmatpush.msra.mxu3 %v276_v55  ;;  %392 = vmatmul.f32.gmra.mxu1 %v982_v56  ;;  %v64_v9 = vld [vmem:[#allocation5 + $0x10] sm:$0xff]  ;;  %v301_v37 = vld [vmem:[#allocation5 + $0x778] sm:$0xff] }
  0x89   :  { %546 = vmatpush.msra.mxu0 %v76_v57  ;;  %568 = vmatpush.msra.mxu1 %v144_v59  ;;  %v132_v10 = vld [vmem:[#allocation5 + $0x230] sm:$0xff]  ;;  %v101_v38 = vld [vmem:[#allocation5 + $0x138] sm:$0xff] }
  0x8a   :  { %592 = vmatpush.msra.mxu2 %v204_v60  ;;  %614 = vmatpush.msra.mxu3 %v272_v61  ;;  %v192_v11 = vld [vmem:[#allocation5 + $0x410] sm:$0xff]  ;;  %v169_v39 = vld [vmem:[#allocation5 + $0x358] sm:$0xff] }
  0x8b   :  { %547 = vmatpush.msra.mxu0 %v72_v62  ;;  %569 = vmatpush.msra.mxu1 %v140_v1  ;;  %v260_v12 = vld [vmem:[#allocation5 + $0x630] sm:$0xff]  ;;  %v229_v41 = vld [vmem:[#allocation5 + $0x538] sm:$0xff] }
  0x8c   :  { %593 = vmatpush.msra.mxu2 %v200_v2  ;;  %615 = vmatpush.msra.mxu3 %v268_v3  ;;  %v256_v16 = vld [vmem:[#allocation5 + $0x610] sm:$0xff]  ;;  %v297_v42 = vld [vmem:[#allocation5 + $0x758] sm:$0xff] }
  0x8d   :  { %504 = vmatmul.f32.vlgmr.msrb.gmra.mxu2 %v958_v58  ;;  %548 = vmatpush.msra.mxu0 %v68_v4  ;;  %v128_v17 = vld [vmem:[#allocation5 + $0x210] sm:$0xff]  ;;  %v97_v43 = vld [vmem:[#allocation5 + $0x118] sm:$0xff] }
  0x8e   :  { %570 = vmatpush.msra.mxu1 %v136_v6  ;;  %594 = vmatpush.msra.mxu2 %v196_v7  ;;  %v165_v44 = vld [vmem:[#allocation5 + $0x338] sm:$0xff] }
  0x8f   :  { %616 = vmatpush.msra.mxu3 %v264_v8  ;;  %458 = vmatmul.f32.vlgmr.msrb.gmra.mxu0 %v960_v63  ;;  %v225_v46 = vld [vmem:[#allocation5 + $0x518] sm:$0xff] }
  0x90   :  { %527 = vmatmul.f32.vlgmr.msrb.gmra.mxu3 %v963_v0  ;;  %549 = vmatpush.msra.mxu0 %v64_v9  ;;  %v293_v47 = vld [vmem:[#allocation5 + $0x738] sm:$0xff] }
  0x91   :  { %571 = vmatpush.msra.mxu1 %v132_v10  ;;  %595 = vmatpush.msra.mxu2 %v192_v11  ;;  %v93_v48 = vld [vmem:[#allocation5 + $0xf8] sm:$0xff] }
  0x92   :  { %617 = vmatpush.msra.mxu3 %v260_v12  ;;  %626 = vmatpush.msrb.mxu0 %v125_v13  ;;  %v161_v49 = vld [vmem:[#allocation5 + $0x318] sm:$0xff] }
  0x93   :  { %672 = vmatpush.msrb.mxu2 %v253_v14  ;;  %325 = vperm.xlu0 %833, %v51_v15   ;;  %v221_v52 = vld [vmem:[#allocation5 + $0x4f8] sm:$0xff] }
  0x94   :  { %481 = vmatmul.f32.vlgmr.msrb.gmra.mxu1 %v966_v5  ;;  %618 = vmatpush.msra.mxu3 %v256_v16  ;;  %v289_v53 = vld [vmem:[#allocation5 + $0x718] sm:$0xff] }
  0x95   :  { %572 = vmatpush.msra.mxu1 %v128_v17  ;;  %627 = vmatpush.msrb.mxu0 %v121_v18  ;;  %v89_v54 = vld [vmem:[#allocation5 + $0xd8] sm:$0xff] }
  0x96   :  { %673 = vmatpush.msrb.mxu2 %v249_v20  ;;  %695 = vmatpush.msrb.mxu3 %v317_v21  ;;  %v157_v55 = vld [vmem:[#allocation5 + $0x2f8] sm:$0xff] }
  0x97   :  { %649 = vmatpush.msrb.mxu1 %v189_v19  ;;  %628 = vmatpush.msrb.mxu0 %v117_v22  ;;  %v217_v57 = vld [vmem:[#allocation5 + $0x4d8] sm:$0xff] }
  0x98   :  { %674 = vmatpush.msrb.mxu2 %v245_v24  ;;  %696 = vmatpush.msrb.mxu3 %v313_v25  ;;  %v285_v59 = vld [vmem:[#allocation5 + $0x6f8] sm:$0xff] }
  0x99   :  { %650 = vmatpush.msrb.mxu1 %v185_v23  ;;  %507 = vmatmul.f32.gmra.mxu2 %v974_v45  ;;  %v85_v60 = vld [vmem:[#allocation5 + $0xb8] sm:$0xff] }
  0x9a   :  { %629 = vmatpush.msrb.mxu0 %v113_v26  ;;  %675 = vmatpush.msrb.mxu2 %v241_v28  ;;  %v153_v61 = vld [vmem:[#allocation5 + $0x2d8] sm:$0xff] }
  0x9b   :  { %651 = vmatpush.msrb.mxu1 %v181_v27  ;;  %697 = vmatpush.msrb.mxu3 %v309_v29  ;;  %v213_v62 = vld [vmem:[#allocation5 + $0x4b8] sm:$0xff] }
  0x9c   :  { %461 = vmatmul.f32.gmra.mxu0 %v976_v50  ;;  %530 = vmatmul.f32.gmra.mxu3 %v979_v51  ;;  %v281_v1 = vld [vmem:[#allocation5 + $0x6d8] sm:$0xff] }
  0x9d   :  { %630 = vmatpush.msrb.mxu0 %v109_v30  ;;  %652 = vmatpush.msrb.mxu1 %v177_v31  ;;  %v81_v2 = vld [vmem:[#allocation5 + $0x98] sm:$0xff] }
  0x9e   :  { %676 = vmatpush.msrb.mxu2 %v237_v32  ;;  %698 = vmatpush.msrb.mxu3 %v305_v33  ;;  %v149_v3 = vld [vmem:[#allocation5 + $0x2b8] sm:$0xff] }
  0x9f   :  { %723 = vperm.xlu1 %834, %v51_v15   ;;  %484 = vmatmul.f32.gmra.mxu1 %v982_v56  ;;  %v209_v4 = vld [vmem:[#allocation5 + $0x498] sm:$0xff] }
  0xa0   :  { %631 = vmatpush.msrb.mxu0 %v105_v34  ;;  %653 = vmatpush.msrb.mxu1 %v173_v35  ;;  %v277_v6 = vld [vmem:[#allocation5 + $0x6b8] sm:$0xff] }
  0xa1   :  { %677 = vmatpush.msrb.mxu2 %v233_v36  ;;  %699 = vmatpush.msrb.mxu3 %v301_v37  ;;  %v77_v7 = vld [vmem:[#allocation5 + $0x78] sm:$0xff] }
  0xa2   :  { %632 = vmatpush.msrb.mxu0 %v101_v38  ;;  %654 = vmatpush.msrb.mxu1 %v169_v39  ;;  %v145_v8 = vld [vmem:[#allocation5 + $0x298] sm:$0xff] }
  0xa3   :  { %678 = vmatpush.msrb.mxu2 %v229_v41  ;;  %700 = vmatpush.msrb.mxu3 %v297_v42  ;;  %v205_v9 = vld [vmem:[#allocation5 + $0x478] sm:$0xff] }
  0xa4   :  { %596 = vmatmul.f32.vlgmr.msra.gmra.mxu2 %v958_v58  ;;  %633 = vmatpush.msrb.mxu0 %v97_v43  ;;  %v273_v10 = vld [vmem:[#allocation5 + $0x698] sm:$0xff] }
  0xa5   :  { %655 = vmatpush.msrb.mxu1 %v165_v44  ;;  %679 = vmatpush.msrb.mxu2 %v225_v46  ;;  %v73_v11 = vld [vmem:[#allocation5 + $0x58] sm:$0xff] }
  0xa6   :  { %701 = vmatpush.msrb.mxu3 %v293_v47  ;;  %550 = vmatmul.f32.vlgmr.msra.gmra.mxu0 %v960_v63  ;;  %v141_v12 = vld [vmem:[#allocation5 + $0x278] sm:$0xff] }
  0xa7   :  { %619 = vmatmul.f32.vlgmr.msra.gmra.mxu3 %v963_v0  ;;  %634 = vmatpush.msrb.mxu0 %v93_v48  ;;  %v201_v13 = vld [vmem:[#allocation5 + $0x458] sm:$0xff] }
  0xa8   :  { %656 = vmatpush.msrb.mxu1 %v161_v49  ;;  %680 = vmatpush.msrb.mxu2 %v221_v52  ;;  %v269_v14 = vld [vmem:[#allocation5 + $0x678] sm:$0xff] }
  0xa9   :  { %702 = vmatpush.msrb.mxu3 %v289_v53  ;;  %573 = vmatmul.f32.vlgmr.msra.gmra.mxu1 %v966_v5  ;;  %v69_v15 = vld [vmem:[#allocation5 + $0x38] sm:$0xff] }
  0xaa   :  { %635 = vmatpush.msrb.mxu0 %v89_v54  ;;  %657 = vmatpush.msrb.mxu1 %v157_v55  ;;  %v137_v16 = vld [vmem:[#allocation5 + $0x258] sm:$0xff] }
  0xab   :  { %681 = vmatpush.msrb.mxu2 %v217_v57  ;;  %703 = vmatpush.msrb.mxu3 %v285_v59  ;;  %v197_v17 = vld [vmem:[#allocation5 + $0x438] sm:$0xff] }
  0xac   :  { %636 = vmatpush.msrb.mxu0 %v85_v60  ;;  %658 = vmatpush.msrb.mxu1 %v153_v61  ;;  %v265_v18 = vld [vmem:[#allocation5 + $0x658] sm:$0xff] }
  0xad   :  { %682 = vmatpush.msrb.mxu2 %v213_v62  ;;  %704 = vmatpush.msrb.mxu3 %v281_v1  ;;  %v65_v19 = vld [vmem:[#allocation5 + $0x18] sm:$0xff] }
  0xae   :  { %599 = vmatmul.f32.gmra.mxu2 %v974_v45  ;;  %637 = vmatpush.msrb.mxu0 %v81_v2  ;;  %v133_v20 = vld [vmem:[#allocation5 + $0x238] sm:$0xff] }
  0xaf   :  { %659 = vmatpush.msrb.mxu1 %v149_v3  ;;  %683 = vmatpush.msrb.mxu2 %v209_v4  ;;  %v193_v21 = vld [vmem:[#allocation5 + $0x418] sm:$0xff] }
  0xb0   :  { %705 = vmatpush.msrb.mxu3 %v277_v6  ;;  %553 = vmatmul.f32.gmra.mxu0 %v976_v50  ;;  %v261_v22 = vld [vmem:[#allocation5 + $0x638] sm:$0xff] }
  0xb1   :  { %622 = vmatmul.f32.gmra.mxu3 %v979_v51  ;;  %638 = vmatpush.msrb.mxu0 %v77_v7  ;;  %v129_v23 = vld [vmem:[#allocation5 + $0x218] sm:$0xff] }
  0xb2   :  { %660 = vmatpush.msrb.mxu1 %v145_v8  ;;  %684 = vmatpush.msrb.mxu2 %v205_v9  ;;  %v257_v24 = vld [vmem:[#allocation5 + $0x618] sm:$0xff]  ;;  %v1033_v9 = vld [vmem:[%s1061_s3 + $0x8] sm:$0x77] }
  0xb3   :  { %706 = vmatpush.msrb.mxu3 %v273_v10  ;;  %576 = vmatmul.f32.gmra.mxu1 %v982_v56 }
  0xb4   :  { %639 = vmatpush.msrb.mxu0 %v73_v11  ;;  %661 = vmatpush.msrb.mxu1 %v141_v12 }
  0xb5   :  { %685 = vmatpush.msrb.mxu2 %v201_v13  ;;  %707 = vmatpush.msrb.mxu3 %v269_v14 }
  0xb6   :  { %640 = vmatpush.msrb.mxu0 %v69_v15  ;;  %662 = vmatpush.msrb.mxu1 %v137_v16 }
  0xb7   :  { %686 = vmatpush.msrb.mxu2 %v197_v17  ;;  %708 = vmatpush.msrb.mxu3 %v265_v18  ;;  %v332_v17 = vperm.slane %v1033_v9, 0 }
  0xb8   :  { %641 = vmatpush.msrb.mxu0 %v65_v19  ;;  %663 = vmatpush.msrb.mxu1 %v133_v20 }
  0xb9   :  { %687 = vmatpush.msrb.mxu2 %v193_v21  ;;  %709 = vmatpush.msrb.mxu3 %v261_v22 }
  0xba   :  { %642 = vmatmul.f32.vlgmr.msrb.gmra.mxu0 %v960_v63  ;;  %688 = vmatmul.f32.vlgmr.msrb.gmra.mxu2 %v958_v58  ;;  %v52_v58 = vld [vmem:[%s1061_s3] sm:$0x77]  ;;  %s920_s3 = smov [#allocation7]  }
  0xbb   :  { %664 = vmatpush.msrb.mxu1 %v129_v23  ;;  %710 = vmatpush.msrb.mxu3 %v257_v24  ;;  %v330_v63 = vperm.slane %v52_v58, 0  ;;  %v726_v27 = vperm.slane %v52_v58, 1  ;;  %v754_v30 = vperm.slane %v52_v58, 2  ;;  %v331_v41 = vperm.slane %v52_v58, 4  ;;  %s810_s6 = sshll.u32 %s920_s3, 4  ;;  %s811_s6 = int_to_ptr.vmem [resolvable:$true] %s810_s6 }
  0xbc   :  { %665 = vmatmul.f32.vlgmr.msrb.gmra.mxu1 %v966_v5  ;;  %711 = vmatmul.f32.vlgmr.msrb.gmra.mxu3 %v963_v0  ;;  %v727_v57 = vperm.slane %v52_v58, 5  ;;  %v755_v6 = vperm.slane %v52_v58, 6  ;;  %v340_v58 = vperm.slane %v332_v17, 0 }
  0xbd   :  { %835 = vset.pattern.permute.xlu0 %v919_v40  ;;  %v338_v25 = vperm.slane %v330_v63, 0  ;;  %v762_v34 = vperm.slane %v754_v30, 2  ;;  %v339_v46 = vperm.slane %v331_v41, 0 }
  0xbe   :  { %v735_v61 = vperm.slane %v727_v57, 1  ;;  %v763_v15 = vperm.slane %v755_v6, 2 }
  0xc2   :  { %645 = vmatmul.f32.gmra.mxu0 %v976_v50  ;;  %691 = vmatmul.f32.gmra.mxu2 %v974_v45 }
  0xc4   :  { %668 = vmatmul.f32.gmra.mxu1 %v982_v56  ;;  %714 = vmatmul.f32.gmra.mxu3 %v979_v51  ;;  %v734_v56 = vperm.slane %v726_v27, 1 }
  0xe8   :  { %v367_v5 = vpop.f32.mrf.mxu0 }
  0xe9   :  { %v1017_v26 = vpop.permute.xlu0 %320 }
  0xea   :  { %v342_v0 = vmul.f32 %v338_v25, %v1017_v26  ;;  %v343_v53 = vmul.f32 %v339_v46, %v1017_v26 }
  0xeb   :  { %v390_v40 = vpop.f32.mrf.mxu1 }
  0xec   :  { %v368_v50 = vadd.f32 %v367_v5, %v342_v0  ;;  %v413_v28 = vpop.f32.mrf.mxu2 }
  0xee   :  { %v391_v45 = vadd.f32 %v390_v40, %v368_v50  ;;  %v344_v50 = vmul.f32 %v340_v58, %v1017_v26 }
  0xef   :  { %v436_v29 = vpop.f32.mrf.mxu3 }
  0xf0   :  { %v414_v51 = vadd.f32 %v413_v28, %v391_v45  ;;  %v728_v28 = vperm.slane %v1033_v9, 1 }
  0xf2   :  { %v437_v31 = vadd.f32 %v436_v29, %v414_v51  ;;  %v1020_v32 = vpop.permute.xlu1 %719  ;;  %v736_v51 = vperm.slane %v728_v28, 1 }
  0xf3   :  { %v738_v33 = vmul.f32 %v734_v56, %v1020_v32  ;;  %v739_v11 = vmul.f32 %v735_v61, %v1020_v32 }
  0xf4   :  { %v740_v41 = vmul.f32 %v736_v51, %v1020_v32 }
  0xf5   :  { %v746_v35 = vadd.f32 %v738_v33, %v437_v31 }
  0xf7   :  { %v766_v36 = vadd.f32 %v762_v34, %v746_v35 }
  0xf9   :  { %vm774_vm0 = vcmp.gt.f32.partialorder %v766_v36, 0.0  ;;  %v782_v37 = vmul.f32 0.01, %v766_v36 }
  0xfb   :  { %v790_v38 = vsel %vm774_vm0, %v766_v36, %v782_v37  ;;  %v756_v37 = vperm.slane %v1033_v9, 2 }
  0xfc   :  { %798 = vst [vmem:[#allocation7] sm:$0xff] %v790_v38 }
 0x102   :  { %v370_v39 = vpop.f32.mrf.mxu0 }
 0x105   :  { %v1023_v42 = vpop.permute.xlu0 %325  ;;  %v393_v44 = vpop.f32.mrf.mxu1 }
 0x106   :  { %v346_v43 = vmul.f32 %v338_v25, %v1023_v42  ;;  %v416_v48 = vpop.f32.mrf.mxu2  ;;  %v347_v13 = vmul.f32 %v339_v46, %v1023_v42 }
 0x108   :  { %v371_v47 = vadd.f32 %v370_v39, %v346_v43 }
 0x109   :  { %v439_v52 = vpop.f32.mrf.mxu3 }
 0x10a   :  { %v394_v49 = vadd.f32 %v393_v44, %v371_v47  ;;  %v348_v44 = vmul.f32 %v340_v58, %v1023_v42  ;;  %v764_v47 = vperm.slane %v756_v37, 2 }
 0x10c   :  { %v417_v54 = vadd.f32 %v416_v48, %v394_v49  ;;  %v459_v55 = vpop.f32.mrf.mxu0  ;;  %v333_v48 = vperm.slane %v1033_v9, 4 }
 0x10d   :  { %v460_v59 = vadd.f32 %v459_v55, %v343_v53 }
 0x10e   :  { %v440_v60 = vadd.f32 %v439_v52, %v417_v54  ;;  %v341_v57 = vperm.slane %v333_v48, 0 }
 0x110   :  { %v505_v3 = vpop.f32.mrf.mxu2  ;;  %v345_v6 = vmul.f32 %v341_v57, %v1017_v26  ;;  %v349_v26 = vmul.f32 %v341_v57, %v1023_v42 }
 0x111   :  { %v1027_v62 = vpop.permute.xlu1 %723  ;;  %v482_v1 = vpop.f32.mrf.mxu1 }
 0x112   :  { %v742_v2 = vmul.f32 %v734_v56, %v1027_v62  ;;  %v483_v4 = vadd.f32 %v482_v1, %v460_v59  ;;  %v743_v5 = vmul.f32 %v735_v61, %v1027_v62  ;;  %v744_v1 = vmul.f32 %v736_v51, %v1027_v62 }
 0x113   :  { %v528_v8 = vpop.f32.mrf.mxu3 }
 0x114   :  { %v750_v7 = vadd.f32 %v742_v2, %v440_v60  ;;  %v506_v10 = vadd.f32 %v505_v3, %v483_v4 }
 0x116   :  { %v770_v12 = vadd.f32 %v762_v34, %v750_v7  ;;  %v529_v14 = vadd.f32 %v528_v8, %v506_v10  ;;  %v729_v8 = vperm.slane %v1033_v9, 5 }
 0x118   :  { %vm778_vm1 = vcmp.gt.f32.partialorder %v770_v12, 0.0  ;;  %v786_v16 = vmul.f32 0.01, %v770_v12  ;;  %v747_v18 = vadd.f32 %v739_v11, %v529_v14 }
 0x119   :  { %v462_v19 = vpop.f32.mrf.mxu0 }
 0x11a   :  { %v794_v20 = vsel %vm778_vm1, %v770_v12, %v786_v16  ;;  %v463_v21 = vadd.f32 %v462_v19, %v347_v13  ;;  %v767_v22 = vadd.f32 %v763_v15, %v747_v18  ;;  %v757_v18 = vperm.slane %v1033_v9, 6 }
 0x11b   :  { %802 = vst [vmem:[#allocation7 + $0x20] sm:$0xff] %v794_v20 }
 0x11c   :  { %v485_v23 = vpop.f32.mrf.mxu1  ;;  %v508_v24 = vpop.f32.mrf.mxu2  ;;  %vm775_vm2 = vcmp.gt.f32.partialorder %v767_v22, 0.0  ;;  %v783_v63 = vmul.f32 0.01, %v767_v22 }
 0x11d   :  { %v486_v25 = vadd.f32 %v485_v23, %v463_v21 }
 0x11e   :  { %v791_v0 = vsel %vm775_vm2, %v767_v22, %v783_v63 }
 0x11f   :  { %v509_v40 = vadd.f32 %v508_v24, %v486_v25  ;;  %v531_v27 = vpop.f32.mrf.mxu3  ;;  %799 = vst [vmem:[#allocation7 + $0x8] sm:$0xff] %v791_v0  ;;  %v765_v25 = vperm.slane %v757_v18, 2 }
 0x121   :  { %v532_v45 = vadd.f32 %v531_v27, %v509_v40 }
 0x123   :  { %v751_v29 = vadd.f32 %v743_v5, %v532_v45  ;;  %v551_v56 = vpop.f32.mrf.mxu0 }
 0x124   :  { %v552_v30 = vadd.f32 %v551_v56, %v344_v50 }
 0x125   :  { %v771_v31 = vadd.f32 %v763_v15, %v751_v29  ;;  %v737_v15 = vperm.slane %v729_v8, 1 }
 0x126   :  { %v574_v33 = vpop.f32.mrf.mxu1 }
 0x127   :  { %vm779_vm3 = vcmp.gt.f32.partialorder %v771_v31, 0.0  ;;  %v787_v34 = vmul.f32 0.01, %v771_v31  ;;  %v575_v35 = vadd.f32 %v574_v33, %v552_v30  ;;  %v597_v36 = vpop.f32.mrf.mxu2  ;;  %v741_v22 = vmul.f32 %v737_v15, %v1020_v32 }
 0x128   :  { %v745_v29 = vmul.f32 %v737_v15, %v1027_v62 }
 0x129   :  { %v795_v38 = vsel %vm779_vm3, %v771_v31, %v787_v34  ;;  %v598_v39 = vadd.f32 %v597_v36, %v575_v35 }
 0x12a   :  { %803 = vst [vmem:[#allocation7 + $0x28] sm:$0xff] %v795_v38  ;;  %v620_v43 = vpop.f32.mrf.mxu3 }
 0x12b   :  { %v621_v46 = vadd.f32 %v620_v43, %v598_v39 }
 0x12d   :  { %v748_v49 = vadd.f32 %v740_v41, %v621_v46  ;;  %v554_v52 = vpop.f32.mrf.mxu0 }
 0x12e   :  { %v555_v53 = vadd.f32 %v554_v52, %v348_v44 }
 0x12f   :  { %v768_v54 = vadd.f32 %v764_v47, %v748_v49 }
 0x130   :  { %v577_v55 = vpop.f32.mrf.mxu1 }
 0x131   :  { %vm776_vm4 = vcmp.gt.f32.partialorder %v768_v54, 0.0  ;;  %v784_v59 = vmul.f32 0.01, %v768_v54  ;;  %v578_v60 = vadd.f32 %v577_v55, %v555_v53  ;;  %v600_v61 = vpop.f32.mrf.mxu2 }
 0x133   :  { %v792_v2 = vsel %vm776_vm4, %v768_v54, %v784_v59  ;;  %v601_v3 = vadd.f32 %v600_v61, %v578_v60 }
 0x134   :  { %800 = vst [vmem:[#allocation7 + $0x10] sm:$0xff] %v792_v2  ;;  %v623_v4 = vpop.f32.mrf.mxu3 }
 0x135   :  { %v624_v7 = vadd.f32 %v623_v4, %v601_v3 }
 0x137   :  { %v752_v10 = vadd.f32 %v744_v1, %v624_v7  ;;  %v643_v11 = vpop.f32.mrf.mxu0 }
 0x138   :  { %v644_v12 = vadd.f32 %v643_v11, %v345_v6 }
 0x139   :  { %v772_v13 = vadd.f32 %v764_v47, %v752_v10  ;;  %v666_v14 = vpop.f32.mrf.mxu1 }
 0x13a   :  { %v667_v16 = vadd.f32 %v666_v14, %v644_v12 }
 0x13b   :  { %vm780_vm5 = vcmp.gt.f32.partialorder %v772_v13, 0.0  ;;  %v788_v17 = vmul.f32 0.01, %v772_v13 }
 0x13d   :  { %v796_v19 = vsel %vm780_vm5, %v772_v13, %v788_v17  ;;  %v689_v20 = vpop.f32.mrf.mxu2 }
 0x13e   :  { %804 = vst [vmem:[#allocation7 + $0x30] sm:$0xff] %v796_v19  ;;  %v690_v21 = vadd.f32 %v689_v20, %v667_v16 }
 0x13f   :  { %v646_v23 = vpop.f32.mrf.mxu0  ;;  %v712_v24 = vpop.f32.mrf.mxu3 }
 0x140   :  { %v647_v58 = vadd.f32 %v646_v23, %v349_v26  ;;  %v713_v63 = vadd.f32 %v712_v24, %v690_v21 }
 0x141   :  { %v669_v5 = vpop.f32.mrf.mxu1 }
 0x142   :  { %v749_v0 = vadd.f32 %v741_v22, %v713_v63  ;;  %v670_v27 = vadd.f32 %v669_v5, %v647_v58 }
 0x144   :  { %v769_v40 = vadd.f32 %v765_v25, %v749_v0 }
 0x145   :  { %v692_v50 = vpop.f32.mrf.mxu2 }
 0x146   :  { %vm777_vm6 = vcmp.gt.f32.partialorder %v769_v40, 0.0  ;;  %v785_v9 = vmul.f32 0.01, %v769_v40  ;;  %v693_v28 = vadd.f32 %v692_v50, %v670_v27 }
 0x147   :  { %v715_v45 = vpop.f32.mrf.mxu3 }
 0x148   :  { %v793_v56 = vsel %vm777_vm6, %v769_v40, %v785_v9  ;;  %v716_v42 = vadd.f32 %v715_v45, %v693_v28 }
 0x149   :  { %801 = vst [vmem:[#allocation7 + $0x18] sm:$0xff] %v793_v56 }
 0x14a   :  { %v753_v32 = vadd.f32 %v745_v29, %v716_v42 }
 0x14c   :  { %v773_v30 = vadd.f32 %v765_v25, %v753_v32 }
 0x14e   :  { %vm781_vm7 = vcmp.gt.f32.partialorder %v773_v30, 0.0  ;;  %v789_v51 = vmul.f32 0.01, %v773_v30 }
 0x150   :  { %v797_v31 = vsel %vm781_vm7, %v773_v30, %v789_v51 }
 0x151   :  { %805 = vst [vmem:[#allocation7 + $0x38] sm:$0xff] %v797_v31 }
 0x152   :  { %818 = dma.vmem_to_hbm [thread:$0]  %s811_s6, 1024, %s813_s9, [#allocation4], %s915_s23, %s915_s23, %s916_s24  }
 0x153   :  { %912 = dma.done.wait [#allocation4], 1024  }
 0x154   :  { %913 = vsyncadd [#allocation4], 4294966272 }
 0x155   :  { %823 = vsyncpa [#allocation3], 1 }
 0x156   :  { %824 = vsyncpa [#allocation6], 1 }
 0x157   :  { %825 = vsyncpa [#allocation4], 1 }

</bundles_post_ra>
